<compile_context>
chip_gen: v7x
topology: tpu7x:2x2x1
jax: 0.10.0
libtpu: 0.0.40
codegen_flags: <defaults>
</compile_context>

<pallas_src>
import math

import jax
import jax.numpy as jnp
from jax import lax
from jax.experimental import pallas as pl
from jax.experimental.pallas import tpu as pltpu


def _round_up(x, m):
    return (x + m - 1) // m * m


# ---------------------------------------------------------------------------
# Kernel 1: flash-style attention (online softmax over Skv tiles, no weights)
# ---------------------------------------------------------------------------
def _make_flash_kernel(*, inv_scale, n_rep, bq, bkv, d, skv_valid,
                       has_mask, need_kv_iota):
    def kernel(*args):
        if has_mask:
            q_ref, k_ref, v_ref, mask_ref, o_ref, m_sc, l_sc, acc_sc = args
        else:
            q_ref, k_ref, v_ref, o_ref, m_sc, l_sc, acc_sc = args
            mask_ref = None

        kv = pl.program_id(3)

        @pl.when(kv == 0)
        def _():
            m_sc[...] = jnp.full_like(m_sc, -jnp.inf)
            l_sc[...] = jnp.zeros_like(l_sc)
            acc_sc[...] = jnp.zeros_like(acc_sc)

        # Native-dtype MXU operands (no f32 upcast); pre-scale Q (Sq*D elems).
        q = q_ref[0].reshape(n_rep * bq, d) * inv_scale    # (n_rep*bq, d)
        k = k_ref[0, 0]                                    # (bkv, d)
        v = v_ref[0, 0]                                    # (bkv, d)

        # Q @ K^T without materializing a transpose: contract the D dims.
        s = lax.dot_general(q, k, (((1,), (1,)), ((), ())),
                            preferred_element_type=jnp.float32)   # (n_rep*bq, bkv)

        if has_mask:
            m3 = mask_ref[0, 0].astype(jnp.float32)        # (bq, bkv), shared by group
            s = (s.reshape(n_rep, bq, bkv) + m3[None]).reshape(n_rep * bq, bkv)
        if need_kv_iota:
            col = lax.broadcasted_iota(jnp.int32, (n_rep * bq, bkv), 1) + kv * bkv
            s = jnp.where(col < skv_valid, s, jnp.float32(-1e30))

        m_prev = m_sc[...]
        m_new = jnp.maximum(m_prev, jnp.max(s, axis=-1, keepdims=True))
        alpha = jnp.exp(m_prev - m_new)
        p = jnp.exp(s - m_new)
        l_sc[...] = alpha * l_sc[...] + jnp.sum(p, axis=-1, keepdims=True)
        pv = lax.dot_general(p.astype(v.dtype), v, (((1,), (0,)), ((), ())),
                             preferred_element_type=jnp.float32)
        acc_sc[...] = alpha * acc_sc[...] + pv
        m_sc[...] = m_new

        @pl.when(kv == pl.num_programs(3) - 1)
        def _():
            inv_l = pl.reciprocal(l_sc[...], approx=False)
            o_ref[0] = (acc_sc[...] * inv_l).reshape(n_rep, bq, d).astype(o_ref.dtype)

    return kernel


# ---------------------------------------------------------------------------
# Kernel 2: full-row softmax, used only when attn_weights must be returned
# ---------------------------------------------------------------------------
def _make_weights_kernel(*, inv_scale, n_rep, bq, skv_pad, d, skv_valid,
                         has_mask, need_kv_iota):
    def kernel(*args):
        if has_mask:
            q_ref, k_ref, v_ref, mask_ref, o_ref, w_ref = args
        else:
            q_ref, k_ref, v_ref, o_ref, w_ref = args
            mask_ref = None

        q = q_ref[0].reshape(n_rep * bq, d) * inv_scale
        k = k_ref[0, 0]
        v = v_ref[0, 0]

        s = lax.dot_general(q, k, (((1,), (1,)), ((), ())),
                            preferred_element_type=jnp.float32)  # (n_rep*bq, skv_pad)

        if has_mask:
            m3 = mask_ref[0, 0].astype(jnp.float32)
            s = (s.reshape(n_rep, bq, skv_pad) + m3[None]).reshape(n_rep * bq, skv_pad)
        if need_kv_iota:
            col = lax.broadcasted_iota(jnp.int32, (n_rep * bq, skv_pad), 1)
            s = jnp.where(col < skv_valid, s, jnp.float32(-1e30))

        # softmax in fp32 (matches nn.functional.softmax(..., dtype=torch.float32))
        s = s - jnp.max(s, axis=-1, keepdims=True)
        p = jnp.exp(s)
        p = p * pl.reciprocal(jnp.sum(p, axis=-1, keepdims=True), approx=False)

        w = p.astype(w_ref.dtype)                          # cast to query dtype
        w_ref[0] = w.reshape(n_rep, bq, skv_pad)
        o = lax.dot_general(w, v, (((1,), (0,)), ((), ())),
                            preferred_element_type=jnp.float32)
        o_ref[0] = o.reshape(n_rep, bq, d).astype(o_ref.dtype)

    return kernel


# ---------------------------------------------------------------------------
# Wrapper
# ---------------------------------------------------------------------------
def ipex_scale_dot_product_llama(
    query,                 # (B, H, Sq, D)
    key,                   # (B, H_kv, Sk_new, D)
    value,                 # (B, H_kv, Sk_new, D)
    scale_attn,            # python float, e.g. sqrt(head_dim)
    layer_past=None,       # optional ((B, H_kv, Sk_past, D), (B, H_kv, Sk_past, D))
    attention_mask=None,   # optional (B, 1, Sq, Skv_total), additive
    head_mask=None,        # unused in the Llama branch
    return_attn_weights=True,
    block_q=256,           # Sq tile (rows per group before *n_rep packing)
    block_kv=512,          # Skv tile for the flash kernel
):
    del head_mask  # not used in the Llama/Mistral/Mixtral/StableLm branch
    B, H, Sq, D = query.shape
    H_kv = key.shape[1]
    assert H % H_kv == 0
    n_rep = H // H_kv  # num_key_value_groups

    # ---- glue (plain JAX): KV-cache concat, present tuple ----
    # TODO(synk): for decode loops the KV cache should stay in HBM and be
    # appended in place via input_output_aliases instead of re-concatenated.
    if layer_past is not None:
        key = jnp.concatenate([layer_past[0], key], axis=-2)
        value = jnp.concatenate([layer_past[1], value], axis=-2)
    present = (key, value)
    Skv = key.shape[2]

    inv_scale = 1.0 / float(scale_attn)
    has_mask = attention_mask is not None

    # ---- tile sizes: sublane-aligned Sq, lane-dense (multiple-of-128) Skv ----
    sq8 = _round_up(Sq, 8)
    bq = sq8 if sq8 <= block_q else block_q
    Sq_pad = _round_up(Sq, bq)
    skv128 = _round_up(Skv, 128)
    bkv = skv128 if skv128 <= block_kv else block_kv
    Skv_pad = _round_up(Skv, bkv)
    need_kv_iota = (Skv_pad != Skv)

    q_p = query if Sq_pad == Sq else jnp.pad(
        query, ((0, 0), (0, 0), (0, Sq_pad - Sq), (0, 0)))
    k_p = key if Skv_pad == Skv else jnp.pad(
        key, ((0, 0), (0, 0), (0, Skv_pad - Skv), (0, 0)))
    v_p = value if Skv_pad == Skv else jnp.pad(
        value, ((0, 0), (0, 0), (0, Skv_pad - Skv), (0, 0)))
    if has_mask:
        mask_p = attention_mask
        if (Sq_pad != Sq) or (Skv_pad != Skv):
            # zero-pad; padded kv columns are neutralized in-kernel via iota mask
            mask_p = jnp.pad(
                mask_p, ((0, 0), (0, 0), (0, Sq_pad - Sq), (0, Skv_pad - Skv)))

    nq = Sq_pad // bq

    if not return_attn_weights:
        # ----------------- flash path: no weights materialization -----------------
        nkv = Skv_pad // bkv
        kernel = _make_flash_kernel(
            inv_scale=inv_scale, n_rep=n_rep, bq=bq, bkv=bkv, d=D,
            skv_valid=Skv, has_mask=has_mask, need_kv_iota=need_kv_iota)

        in_specs = [
            pl.BlockSpec((1, n_rep, bq, D), lambda b, hk, qi, kv: (b, hk, qi, 0)),
            pl.BlockSpec((1, 1, bkv, D), lambda b, hk, qi, kv: (b, hk, kv, 0)),
            pl.BlockSpec((1, 1, bkv, D), lambda b, hk, qi, kv: (b, hk, kv, 0)),
        ]
        inputs = (q_p, k_p, v_p)
        if has_mask:
            in_specs.append(
                pl.BlockSpec((1, 1, bq, bkv), lambda b, hk, qi, kv: (b, 0, qi, kv)))
            inputs = inputs + (mask_p,)

        out = pl.pallas_call(
            kernel,
            out_shape=jax.ShapeDtypeStruct((B, H, Sq_pad, D), query.dtype),
            grid_spec=pltpu.PrefetchScalarGridSpec(
                num_scalar_prefetch=0,
                grid=(B, H_kv, nq, nkv),
                in_specs=in_specs,
                out_specs=pl.BlockSpec((1, n_rep, bq, D),
                                       lambda b, hk, qi, kv: (b, hk, qi, 0)),
                scratch_shapes=[
                    pltpu.VMEM((n_rep * bq, 1), jnp.float32),   # running max m
                    pltpu.VMEM((n_rep * bq, 1), jnp.float32),   # running sum l
                    pltpu.VMEM((n_rep * bq, D), jnp.float32),   # accumulator
                ],
            ),
            compiler_params=pltpu.CompilerParams(
                dimension_semantics=("parallel", "parallel", "parallel", "arbitrary"),
            ),
        )(*inputs)

        attn_output = out[:, :, :Sq, :]
        return attn_output, None, present

    # ----------------- weights path: full-row softmax, weights stored -----------------
    kernel = _make_weights_kernel(
        inv_scale=inv_scale, n_rep=n_rep, bq=bq, skv_pad=Skv_pad, d=D,
        skv_valid=Skv, has_mask=has_mask, need_kv_iota=need_kv_iota)

    in_specs = [
        pl.BlockSpec((1, n_rep, bq, D), lambda b, hk, qi: (b, hk, qi, 0)),
        pl.BlockSpec((1, 1, Skv_pad, D), lambda b, hk, qi: (b, hk, 0, 0)),
        pl.BlockSpec((1, 1, Skv_pad, D), lambda b, hk, qi: (b, hk, 0, 0)),
    ]
    inputs = (q_p, k_p, v_p)
    if has_mask:
        in_specs.append(
            pl.BlockSpec((1, 1, bq, Skv_pad), lambda b, hk, qi: (b, 0, qi, 0)))
        inputs = inputs + (mask_p,)

    attn_output_p, attn_weights_p = pl.pallas_call(
        kernel,
        out_shape=(
            jax.ShapeDtypeStruct((B, H, Sq_pad, D), query.dtype),
            jax.ShapeDtypeStruct((B, H, Sq_pad, Skv_pad), query.dtype),
        ),
        grid_spec=pltpu.PrefetchScalarGridSpec(
            num_scalar_prefetch=0,
            grid=(B, H_kv, nq),
            in_specs=in_specs,
            out_specs=[
                pl.BlockSpec((1, n_rep, bq, D), lambda b, hk, qi: (b, hk, qi, 0)),
                pl.BlockSpec((1, n_rep, bq, Skv_pad), lambda b, hk, qi: (b, hk, qi, 0)),
            ],
        ),
        compiler_params=pltpu.CompilerParams(
            dimension_semantics=("parallel", "parallel", "parallel"),
        ),
    )(*inputs)

    attn_output = attn_output_p[:, :, :Sq, :]
    attn_weights = attn_weights_p[:, :, :Sq, :Skv]
    return attn_output, attn_weights, present


# ---------------------------------------------------------------------------
# Pure-JAX reference mirroring the PyTorch Llama branch
# ---------------------------------------------------------------------------
def _reference(query, key, value, scale_attn, layer_past, attention_mask):
    if layer_past is not None:
        key = jnp.concatenate([layer_past[0], key], axis=-2)
        value = jnp.concatenate([layer_past[1], value], axis=-2)
    H = query.shape[1]
    n_rep = H // key.shape[1]
    k_rep = jnp.repeat(key, n_rep, axis=1)
    v_rep = jnp.repeat(value, n_rep, axis=1)
    w = jnp.einsum("bhqd,bhkd->bhqk", query, k_rep) / scale_attn
    if attention_mask is not None:
        w = w + attention_mask
    w = jax.nn.softmax(w.astype(jnp.float32), axis=-1).astype(query.dtype)
    o = jnp.einsum("bhqk,bhkd->bhqd", w, v_rep)
    return o, w


if __name__ == "__main__":
    B, H, H_kv, Sq, S_past, D = 2, 4, 2, 8, 8, 32
    scale_attn = math.sqrt(D)

    key0 = jax.random.PRNGKey(0)
    ks = jax.random.split(key0, 5)
    query = jax.random.normal(ks[0], (B, H, Sq, D), dtype=jnp.float32)
    key_new = jax.random.normal(ks[1], (B, H_kv, Sq, D), dtype=jnp.float32)
    value_new = jax.random.normal(ks[2], (B, H_kv, Sq, D), dtype=jnp.float32)
    past_key = jax.random.normal(ks[3], (B, H_kv, S_past, D), dtype=jnp.float32)
    past_value = jax.random.normal(ks[4], (B, H_kv, S_past, D), dtype=jnp.float32)
    layer_past = (past_key, past_value)

    Skv = S_past + Sq
    row = jnp.arange(Sq)[:, None] + S_past
    col = jnp.arange(Skv)[None, :]
    causal = jnp.where(col <= row, 0.0, -1e9).astype(jnp.float32)
    attention_mask = jnp.broadcast_to(causal, (B, 1, Sq, Skv))

    # Path 1: full module semantics (attn_weights returned)
    o1, w1, present = ipex_scale_dot_product_llama(
        query, key_new, value_new, scale_attn,
        layer_past=layer_past, attention_mask=attention_mask,
        return_attn_weights=True)

    # Path 2: flash path (no weights materialization)
    o2, w2, _ = ipex_scale_dot_product_llama(
        query, key_new, value_new, scale_attn,
        layer_past=layer_past, attention_mask=attention_mask,
        return_attn_weights=False)

    # Path 3: flash path, no attention mask (mask DMA skipped entirely)
    o3, _, _ = ipex_scale_dot_product_llama(
        query, key_new, value_new, scale_attn,
        layer_past=layer_past, attention_mask=None,
        return_attn_weights=False)

    jax.block_until_ready((o1, w1, o2, o3, present))

    ref_o, ref_w = _reference(query, key_new, value_new, scale_attn,
                              layer_past, attention_mask)
    ref_o_nomask, _ = _reference(query, key_new, value_new, scale_attn,
                                 layer_past, None)

    assert o1.shape == (B, H, Sq, D)
    assert w1.shape == (B, H, Sq, Skv)
    assert present[0].shape == (B, H_kv, Skv, D)
    assert present[1].shape == (B, H_kv, Skv, D)
    assert w2 is None
    assert jnp.allclose(o1, ref_o, atol=2e-5, rtol=2e-5)
    assert jnp.allclose(w1, ref_w, atol=2e-5, rtol=2e-5)
    assert jnp.allclose(o2, ref_o, atol=2e-5, rtol=2e-5)
    assert jnp.allclose(o3, ref_o_nomask, atol=2e-5, rtol=2e-5)

    print("KERNEL_OK")
</pallas_src>

<mosaic_0001>
module attributes {stable_mosaic.version = 11 : i64} {
  func.func @kernel(%arg0: i32, %arg1: i32, %arg2: i32, %arg3: memref<1x2x8x32xf32, #tpu.memory_space<vmem>>, %arg4: memref<1x1x128x32xf32, #tpu.memory_space<vmem>>, %arg5: memref<1x1x128x32xf32, #tpu.memory_space<vmem>>, %arg6: memref<1x1x8x128xf32, #tpu.memory_space<vmem>>, %arg7: memref<1x2x8x32xf32, #tpu.memory_space<vmem>>, %arg8: memref<1x2x8x128xf32, #tpu.memory_space<vmem>>) attributes {dimension_semantics = [#tpu.dimension_semantics<parallel>, #tpu.dimension_semantics<parallel>, #tpu.dimension_semantics<parallel>], iteration_bounds = array<i64: 2, 2, 1>, scalar_prefetch = 0 : i64, scratch_operands = 0 : i64, tpu.core_type = #tpu.core_type<tc>, window_params = [{transform_indices = @transform_0, window_bounds = array<i64: 1, 2, 8, 32>}, {transform_indices = @transform_1, window_bounds = array<i64: 1, 1, 128, 32>}, {transform_indices = @transform_2, window_bounds = array<i64: 1, 1, 128, 32>}, {transform_indices = @transform_3, window_bounds = array<i64: 1, 1, 8, 128>}, {transform_indices = @transform_4, window_bounds = array<i64: 1, 2, 8, 32>}, {transform_indices = @transform_5, window_bounds = array<i64: 1, 2, 8, 128>}]} {
    %c0 = arith.constant 0 : index
    %c0_0 = arith.constant 0 : index
    %c0_1 = arith.constant 0 : index
    %c0_2 = arith.constant 0 : index
    %0 = vector.load %arg3[%c0, %c0_0, %c0_1, %c0_2] : memref<1x2x8x32xf32, #tpu.memory_space<vmem>>, vector<1x2x8x32xf32>
    %1 = vector.shape_cast %0 : vector<1x2x8x32xf32> to vector<2x8x32xf32>
    %2 = vector.shape_cast %1 : vector<2x8x32xf32> to vector<16x32xf32>
    %cst = arith.constant 0.176776692 : f32
    %3 = vector.broadcast %cst : f32 to vector<16x32xf32>
    %4 = arith.mulf %2, %3 : vector<16x32xf32>
    %c0_3 = arith.constant 0 : index
    %c0_4 = arith.constant 0 : index
    %c0_5 = arith.constant 0 : index
    %c0_6 = arith.constant 0 : index
    %5 = vector.load %arg4[%c0_3, %c0_4, %c0_5, %c0_6] : memref<1x1x128x32xf32, #tpu.memory_space<vmem>>, vector<1x1x128x32xf32>
    %6 = vector.shape_cast %5 : vector<1x1x128x32xf32> to vector<128x32xf32>
    %c0_7 = arith.constant 0 : index
    %c0_8 = arith.constant 0 : index
    %c0_9 = arith.constant 0 : index
    %c0_10 = arith.constant 0 : index
    %7 = vector.load %arg5[%c0_7, %c0_8, %c0_9, %c0_10] : memref<1x1x128x32xf32, #tpu.memory_space<vmem>>, vector<1x1x128x32xf32>
    %8 = vector.shape_cast %7 : vector<1x1x128x32xf32> to vector<128x32xf32>
    %cst_11 = arith.constant dense<0.000000e+00> : vector<16x128xf32>
    %9 = tpu.matmul %4, %6, %cst_11 {dimension_numbers = #tpu.dot_dimension_numbers<[1], [1], [0], [0], [0, 0, 1, 0], [], []>} : vector<16x32xf32>, vector<128x32xf32>, vector<16x128xf32> -> vector<16x128xf32>
    %c0_12 = arith.constant 0 : index
    %c0_13 = arith.constant 0 : index
    %c0_14 = arith.constant 0 : index
    %c0_15 = arith.constant 0 : index
    %10 = vector.load %arg6[%c0_12, %c0_13, %c0_14, %c0_15] : memref<1x1x8x128xf32, #tpu.memory_space<vmem>>, vector<1x1x8x128xf32>
    %11 = vector.shape_cast %10 : vector<1x1x8x128xf32> to vector<8x128xf32>
    %12 = vector.shape_cast %9 : vector<16x128xf32> to vector<2x8x128xf32>
    %13 = vector.shape_cast %11 : vector<8x128xf32> to vector<1x8x128xf32>
    %14 = vector.broadcast %13 : vector<1x8x128xf32> to vector<2x8x128xf32>
    %15 = arith.addf %12, %14 : vector<2x8x128xf32>
    %16 = vector.shape_cast %15 : vector<2x8x128xf32> to vector<16x128xf32>
    %17 = tpu.iota {dimensions = array<i32: 1>} : vector<16x128xi32>
    %c16_i32 = arith.constant 16 : i32
    %18 = vector.broadcast %c16_i32 : i32 to vector<16x128xi32>
    %19 = arith.cmpi slt, %17, %18 : vector<16x128xi32>
    %cst_16 = arith.constant -1.000000e+30 : f32
    %20 = vector.broadcast %cst_16 : f32 to vector<16x128xf32>
    %21 = arith.select %19, %16, %20 : vector<16x128xi1>, vector<16x128xf32>
    %cst_17 = arith.constant dense<0xFF800000> : vector<16xf32>
    %22 = vector.multi_reduction <maximumf>, %21, %cst_17 [1] : vector<16x128xf32> to vector<16xf32>
    %23 = vector.shape_cast %22 : vector<16xf32> to vector<16x1xf32>
    %24 = vector.broadcast %23 : vector<16x1xf32> to vector<16x128xf32>
    %25 = arith.subf %21, %24 : vector<16x128xf32>
    %26 = math.exp %25 : vector<16x128xf32>
    %cst_18 = arith.constant dense<0.000000e+00> : vector<16xf32>
    %27 = vector.multi_reduction <add>, %26, %cst_18 [1] : vector<16x128xf32> to vector<16xf32>
    %28 = vector.shape_cast %27 : vector<16xf32> to vector<16x1xf32>
    %29 = tpu.reciprocal %28 : vector<16x1xf32> -> vector<16x1xf32>
    %30 = vector.broadcast %29 : vector<16x1xf32> to vector<16x128xf32>
    %31 = arith.mulf %26, %30 : vector<16x128xf32>
    %32 = vector.shape_cast %31 : vector<16x128xf32> to vector<2x8x128xf32>
    %c0_19 = arith.constant 0 : index
    %c0_20 = arith.constant 0 : index
    %c0_21 = arith.constant 0 : index
    %c0_22 = arith.constant 0 : index
    %33 = vector.load %arg8[%c0_19, %c0_20, %c0_21, %c0_22] : memref<1x2x8x128xf32, #tpu.memory_space<vmem>>, vector<1x2x8x128xf32>
    %34 = vector.shape_cast %33 : vector<1x2x8x128xf32> to vector<2x8x128xf32>
    %35 = vector.shape_cast %32 : vector<2x8x128xf32> to vector<1x2x8x128xf32>
    tpu.vector_store %arg8[%c0_19, %c0_20, %c0_21, %c0_22], %35 {strides = array<i32>} : memref<1x2x8x128xf32, #tpu.memory_space<vmem>>, vector<1x2x8x128xf32>,
    %cst_23 = arith.constant dense<0.000000e+00> : vector<16x32xf32>
    %36 = tpu.matmul %31, %8, %cst_23 {dimension_numbers = #tpu.dot_dimension_numbers<[1], [0], [0], [1], [0, 0, 1, 1], [], []>} : vector<16x128xf32>, vector<128x32xf32>, vector<16x32xf32> -> vector<16x32xf32>
    %37 = vector.shape_cast %36 : vector<16x32xf32> to vector<2x8x32xf32>
    %c0_24 = arith.constant 0 : index
    %c0_25 = arith.constant 0 : index
    %c0_26 = arith.constant 0 : index
    %c0_27 = arith.constant 0 : index
    %38 = vector.load %arg7[%c0_24, %c0_25, %c0_26, %c0_27] : memref<1x2x8x32xf32, #tpu.memory_space<vmem>>, vector<1x2x8x32xf32>
    %39 = vector.shape_cast %38 : vector<1x2x8x32xf32> to vector<2x8x32xf32>
    %40 = vector.shape_cast %37 : vector<2x8x32xf32> to vector<1x2x8x32xf32>
    tpu.vector_store %arg7[%c0_24, %c0_25, %c0_26, %c0_27], %40 {strides = array<i32>} : memref<1x2x8x32xf32, #tpu.memory_space<vmem>>, vector<1x2x8x32xf32>,
    return
  }
  func.func @transform_0(%arg0: i32, %arg1: i32, %arg2: i32) -> (i32, i32, i32, i32) {
    %c0_i32 = arith.constant 0 : i32
    %c0_i32_0 = arith.constant 0 : i32
    return %arg0, %arg1, %arg2, %c0_i32 : i32, i32, i32, i32
  }
  func.func @transform_1(%arg0: i32, %arg1: i32, %arg2: i32) -> (i32, i32, i32, i32) {
    %c0_i32 = arith.constant 0 : i32
    %c0_i32_0 = arith.constant 0 : i32
    %c0_i32_1 = arith.constant 0 : i32
    return %arg0, %arg1, %c0_i32, %c0_i32_0 : i32, i32, i32, i32
  }
  func.func @transform_2(%arg0: i32, %arg1: i32, %arg2: i32) -> (i32, i32, i32, i32) {
    %c0_i32 = arith.constant 0 : i32
    %c0_i32_0 = arith.constant 0 : i32
    %c0_i32_1 = arith.constant 0 : i32
    return %arg0, %arg1, %c0_i32, %c0_i32_0 : i32, i32, i32, i32
  }
  func.func @transform_3(%arg0: i32, %arg1: i32, %arg2: i32) -> (i32, i32, i32, i32) {
    %c0_i32 = arith.constant 0 : i32
    %c0_i32_0 = arith.constant 0 : i32
    %c0_i32_1 = arith.constant 0 : i32
    return %arg0, %c0_i32, %arg2, %c0_i32_0 : i32, i32, i32, i32
  }
  func.func @transform_4(%arg0: i32, %arg1: i32, %arg2: i32) -> (i32, i32, i32, i32) {
    %c0_i32 = arith.constant 0 : i32
    %c0_i32_0 = arith.constant 0 : i32
    return %arg0, %arg1, %arg2, %c0_i32 : i32, i32, i32, i32
  }
  func.func @transform_5(%arg0: i32, %arg1: i32, %arg2: i32) -> (i32, i32, i32, i32) {
    %c0_i32 = arith.constant 0 : i32
    %c0_i32_0 = arith.constant 0 : i32
    return %arg0, %arg1, %arg2, %c0_i32 : i32, i32, i32, i32
  }
}

</mosaic_0001>

<bundles_post_ra>
// kernel: tpu_custom_call.1
= control target key start
LH: loop header
LB: loop body
LE: loop exit
PB: predicated region body
PF: predicated region fallthrough
CT: control target
= control target key end

     0   :  { %11 = vsyncpa [#allocation3], 0  ;;  %s1658_s0 = inlined_call_operand.vmem [shape: f32[2,4,8,32], index: 0, kind: input, shape index: {}]   ;;  %s1659_s1 = inlined_call_operand.vmem [shape: f32[2,2,128,32], index: 1, kind: input, shape index: {}]   ;;  %s1660_s2 = inlined_call_operand.vmem [shape: f32[2,2,128,32], index: 2, kind: input, shape index: {}]   ;;  %s1661_s3 = inlined_call_operand.vmem [shape: f32[2,1,8,128], index: 3, kind: input, shape index: {}]   ;;  %s1662_s4 = inlined_call_operand.hbm [shape: f32[2,4,8,32], index: 4, kind: output, shape index: {0}]   ;;  %s1663_s5 = inlined_call_operand.hbm [shape: f32[2,4,8,128], index: 5, kind: output, shape index: {1}]  }
   0x1   :  { %13 = vsyncpa [#allocation3 + $0x1], 0 }
   0x2   :  { %14 = vsyncpa [#allocation5], 0 }
   0x3   :  { %16 = vsyncpa [#allocation5 + $0x1], 0  ;;  %s1359_s18 = smov 0   ;;  %s1361_s19 = smov 0  }
   0x4   :  { %s1363_s20 = smov 0   ;;  %s1365_s21 = smov 0  }
   0x5   :  { %s1367_s22 = smov 0   ;;  %s1369_s23 = smov 0  }
   0x6   :  { %s1371_s24 = smov 0   ;;  %s1373_s25 = smov 0  }
   0x7 LB: > { %s880_s26 = sadd.s32 4294967295, %s1323_s25   ;;  %s881_s27 = sadd.s32 4294967294, %s1323_s25   ;;  %s1323_s25 = sphi %s1373_s25, %s22_s25   ;;  %s1319_s24 = sphi %s1371_s24, %s1676_s24   ;;  %s1315_s23 = sphi %s1369_s23, %s1675_s23   ;;  %s1311_s22 = sphi %s1367_s22, %s1674_s22   ;;  %s1307_s21 = sphi %s1365_s21, %s1673_s21   ;;  %s1303_s20 = sphi %s1363_s20, %s1672_s20   ;;  %s1299_s19 = sphi %s1361_s19, %s1671_s19   ;;  %s1295_s18 = sphi %s1359_s18, %s1670_s18  }
   0x8   : > { %s37_s28 = sadd.s32 1, %s1315_s23  ;;  %s41_s29 = sadd.s32 1, %s1319_s24 }
   0x9   : > { %p39_p0 = scmp.ge.s32.totalorder %s37_s28, 2  ;;  %p176_p1 = scmp.ne.s32.totalorder %s1303_s20, %s1299_s19 }
   0xa   : > { %p177_p2 = scmp.eq.s32.totalorder %s880_s26, 3  ;;  %p182_p5 = scmp.ne.s32.totalorder %s1299_s19, %s1295_s18 }
   0xb   : > { %s1678_s28 = smov (%p39_p0, %s37_s28), 0  ;;  %s1680_s29 = smov (!%p39_p0, %s41_s29), %s1319_s24 }
   0xc   : > { %s160_s30 = ssub.s32 %s1315_s23, %s1678_s28  ;;  %p1410_p3 = por %p177_p2, %p176_p1 }
   0xd   : > { %p43_p4 = scmp.ge.s32.totalorder %s1680_s29, 2  ;;  %p183_p6 = scmp.eq.s32.totalorder %s881_s27, 3 }
   0xe   : > { %p884_p7 = scmp.ge.s32.totalorder %s1323_s25, 1  ;;  %p281_p9 = scmp.lt.s32.totalorder %s1323_s25, 5 }
   0xf   : > { %s1682_s29 = smov (%p43_p4, %s1680_s29), 0  ;;  %p1419_p8 = por %p183_p6, %p182_p5 }
  0x10   : > { %s159_s8 = ssub.s32 %s1319_s24, %s1682_s29  ;;  %s166_s9 = sadd.s32 1, %s1303_s20 }
  0x11   : > { %s161_s10 = sor.u32 %s160_s30, %s159_s8  ;;  %p282_p10 = pnand %p884_p7, %p281_p9 }
  0x12   : > { %p164_p11 = scmp.eq.s32.totalorder %s161_s10, 0  ;;  %p347_p12 = scmp.lt.s32.totalorder (!%p282_p10), %s1311_s22, 1  ;;  %vm422_vm0 = vcmask (!%p282_p10), 261120   ;;  %v555_v29 = vlaneseq (!%p282_p10) }
  0x13   : > { %285 = sbr.rel (%p282_p10) target bundleno = 858 (0x35a), region = 36  ;;  %p361_p13 = scmp.lt.s32.totalorder (!%p282_p10), %s1307_s21, 1  ;;  %vm1453_vm1 = vmpackc.low (!%p282_p10), %vm422_vm0, %vm422_vm0 }
  0x14   : > { %s1428_s11 = scalar_select %p164_p11, %s1303_s20, %s166_s9  }
  0x15   : > { %s1433_s12 = sshll.u32 (!%p282_p10), %s1307_s21, 1  ;;  %v556_v30 = vand.u32 (!%p282_p10), 127, %v555_v29 }
  0x16   : > { %p349_p0 = scmp.lt.s32.totalorder (!%p282_p10), %s1433_s12, 3 }
  0x17   : > { %vm557_vm2 = vcmp.lt.s32.totalorder (!%p282_p10), %v556_v30, 16 }
  0x1a   : > { %s1436_s13 = scalar_select %p347_p12, %s1311_s22, 1 }
  0x1b   : > { %s1684_s21 = smov (!%p361_p13, %s1307_s21), 1 }
  0x1c   : > { %s891_s14 = sshll.u32 %s1436_s13, 5  ;;  %s890_s15 = sshll.u32 %s1684_s21, 4 }
  0x1d   : > { %s1441_s16 = sadd.s32 %s891_s14, %s890_s15  ;;  %s888_s21 = sshll.u32 %s1436_s13, 2 }
  0x1e   : > { %s892_s17 = sshll.u32 %s1441_s16, 3  ;;  %s896_s27 = sshll.u32 %s1436_s13, 3 }
  0x1f   : > { %s1449_s30 = scalar_lea.vmem %s1659_s1, %s892_s17  ;;  %s1525_s13 = scalar_lea.vmem %s1660_s2, %s892_s17 }
  0x20   : > { %v390_v1 = vld [vmem:[%s1449_s30] sm:$0xff]  ;;  %v391_v2 = vld [vmem:[%s1449_s30 + $0x8] sm:$0xff]  ;;  %v392_v3 = vld [vmem:[%s1449_s30 + $0x10] sm:$0xff]  ;;  %s350_s8 = scalar_select %p349_p0, %s1433_s12, 3 }
  0x21   : > { %v1031_v4 = vpack.c.bf16 %v391_v2, %v390_v1  ;;  %v393_v5 = vld [vmem:[%s1449_s30 + $0x18] sm:$0xff]  ;;  %v394_v8 = vld [vmem:[%s1449_s30 + $0x20] sm:$0xff]  ;;  %v395_v9 = vld [vmem:[%s1449_s30 + $0x28] sm:$0xff]  ;;  %s1544_s16 = sand.u32 1, %s1299_s19   ;;  %s918_s15 = sshll.u32 %s1311_s22, 2 }
  0x22   : > { %v1037_v6 = vpack.c.bf16 %v393_v5, %v392_v3  ;;  %s355_s9 = sadd.s32 %s888_s21, %s350_s8  ;;  %v1043_v11 = vpack.c.bf16 %v395_v9, %v394_v8  ;;  %v396_v12 = vld [vmem:[%s1449_s30 + $0x30] sm:$0xff]  ;;  %v397_v13 = vld [vmem:[%s1449_s30 + $0x38] sm:$0xff]  ;;  %v398_v15 = vld [vmem:[%s1449_s30 + $0x40] sm:$0xff]  ;;  %s885_s17 = sshll.u32 %s1544_s16, 4 }
  0x23   : > { %1033 = vmatprep.subr.msk.bf16.mxu0 %vm1453_vm1, %v1031_v4  ;;  %s889_s10 = sshll.u32 %s355_s9, 3  ;;  %v1049_v14 = vpack.c.bf16 %v397_v13, %v396_v12  ;;  %v399_v16 = vld [vmem:[%s1449_s30 + $0x48] sm:$0xff]  ;;  %v400_v18 = vld [vmem:[%s1449_s30 + $0x50] sm:$0xff]  ;;  %v401_v19 = vld [vmem:[%s1449_s30 + $0x58] sm:$0xff]  ;;  %s345_s14 = scalar_lea.vmem [#allocation4], %s885_s17 }
  0x24   : > { %1036 = vmatpush3.bf16.xpose.msk.msra.mxu0 %vm1453_vm1, %v1031_v4  ;;  %s1470_s26 = scalar_lea.vmem %s1658_s0, %s889_s10  ;;  %v1055_v17 = vpack.c.bf16 %v399_v16, %v398_v15  ;;  %v1061_v20 = vpack.c.bf16 %v401_v19, %v400_v18  ;;  %v402_v21 = vld [vmem:[%s1449_s30 + $0x60] sm:$0xff]  ;;  %v403_v22 = vld [vmem:[%s1449_s30 + $0x68] sm:$0xff]  ;;  %v404_v24 = vld [vmem:[%s1449_s30 + $0x70] sm:$0xff]  ;;  %s698_s21 = sshll.u32 %s345_s14, 4  ;;  %s1561_s21 = int_to_ptr.vmem [resolvable:$true] %s698_s21 }
  0x25   : > { %1039 = vmatprep.subr.msk.bf16.mxu0 %vm1453_vm1, %v1037_v6  ;;  %v386_v7 = vld [vmem:[%s1470_s26] sm:$0xff]  ;;  %v1067_v23 = vpack.c.bf16 %v403_v22, %v402_v21  ;;  %v405_v25 = vld [vmem:[%s1449_s30 + $0x78] sm:$0xff]  ;;  %v387_v27 = vld [vmem:[%s1470_s26 + $0x8] sm:$0xff]  ;;  %s383_s30 = scalar_lea.vmem %s1661_s3, %s896_s27  ;;  %s1551_s26 = sadd.s32 %s918_s15, %s1433_s12 }
  0x26   : > { %v388_v10 = vmul.f32 0.17677669, %v386_v7  ;;  %v1073_v26 = vpack.c.bf16 %v405_v25, %v404_v24  ;;  %v389_v28 = vmul.f32 0.17677669, %v387_v27  ;;  %v552_v31 = vld [vmem:[%s383_s30] sm:$0xff]  ;;  %v407_v39 = vld [vmem:[%s1525_s13 + $0x8] sm:$0xff] }
  0x27   : > { %v406_v38 = vld [vmem:[%s1525_s13] sm:$0xff]  ;;  %v408_v40 = vld [vmem:[%s1525_s13 + $0x10] sm:$0xff]  ;;  %v409_v42 = vld [vmem:[%s1525_s13 + $0x18] sm:$0xff]  ;;  %s1664_s27 = sshll.u32 %s1551_s26, 7  ;;  %s663_s10 = scalar_lea.sflag [#allocation5], %s1544_s16 }
  0x28   : > { %993 = vmatprep.mubr.msk.f32.mxu0 %vm422_vm0, %v388_v10  ;;  %v1079_v41 = vpack.c.bf16 %v407_v39, %v406_v38  ;;  %v1083_v43 = vpack.c.bf16 %v409_v42, %v408_v40  ;;  %v410_v44 = vld [vmem:[%s1525_s13 + $0x20] sm:$0xff]  ;;  %v411_v45 = vld [vmem:[%s1525_s13 + $0x28] sm:$0xff]  ;;  %v412_v47 = vld [vmem:[%s1525_s13 + $0x30] sm:$0xff]  ;;  %s1559_s9 = scalar_lea.hbm %s1663_s5, %s1664_s27  ;;  %s1325_s22 = smov [#allocation4]  }
  0x29   : > { %v1087_v46 = vpack.c.bf16 %v411_v45, %v410_v44  ;;  %v413_v48 = vld [vmem:[%s1525_s13 + $0x38] sm:$0xff]  ;;  %v414_v58 = vld [vmem:[%s1525_s13 + $0x40] sm:$0xff]  ;;  %v415_v59 = vld [vmem:[%s1525_s13 + $0x48] sm:$0xff]  ;;  %s1201_s12 = sshll.u32 %s1325_s22, 4  ;;  %s1202_s12 = int_to_ptr.vmem [resolvable:$false] %s1201_s12 }
  0x2a   : > { %1080 = vmatprep.subr.bf16.mxu1 %v1079_v41  ;;  %v1091_v49 = vpack.c.bf16 %v413_v48, %v412_v47  ;;  %v1095_v60 = vpack.c.bf16 %v415_v59, %v414_v58  ;;  %v416_v61 = vld [vmem:[%s1525_s13 + $0x50] sm:$0xff]  ;;  %v417_v62 = vld [vmem:[%s1525_s13 + $0x58] sm:$0xff]  ;;  %v418_v0 = vld [vmem:[%s1525_s13 + $0x60] sm:$0xff]  ;;  %p1204_p5 = scmp.lt.s32.totalorder %s1561_s21, %s1202_s12 }
  0x2b   : > { %1082 = vmatpush3.bf16.msra.mxu1 %v1079_v41  ;;  %v1099_v63 = vpack.c.bf16 %v417_v62, %v416_v61  ;;  %v419_v1 = vld [vmem:[%s1525_s13 + $0x68] sm:$0xff]  ;;  %v420_v2 = vld [vmem:[%s1525_s13 + $0x70] sm:$0xff]  ;;  %v421_v4 = vld [vmem:[%s1525_s13 + $0x78] sm:$0xff]  ;;  %s1197_s13 = scalar_lea.vmem %s1561_s21, 256 }
  0x2c   : > { %1042 = vmatpush3.bf16.xpose.msk.msra.mxu0 %vm1453_vm1, %v1037_v6  ;;  %1084 = vmatprep.subr.bf16.mxu1 %v1083_v43  ;;  %v1103_v3 = vpack.c.bf16 %v419_v1, %v418_v0  ;;  %v1107_v5 = vpack.c.bf16 %v421_v4, %v420_v2  ;;  %p1198_p1 = scmp.ne.s32.totalorder %s1561_s21, %s1197_s13 }
  0x2d   : > { %1045 = vmatprep.subr.msk.bf16.mxu0 %vm1453_vm1, %v1043_v11 }
  0x2e   : > { %p1199_p2 = pnand %p1198_p1, %p1410_p3 }
  0x2f   : > { %1086 = vmatpush3.bf16.msra.mxu1 %v1083_v43 }
  0x30   : > { %1088 = vmatprep.subr.bf16.mxu1 %v1087_v46  ;;  %p1200_p4 = pneg %p1199_p2 }
  0x33   : > { %1090 = vmatpush3.bf16.msra.mxu1 %v1087_v46 }
  0x34   : > { %1048 = vmatpush3.bf16.xpose.msk.msra.mxu0 %vm1453_vm1, %v1043_v11  ;;  %1092 = vmatprep.subr.bf16.mxu1 %v1091_v49 }
  0x35   : > { %1051 = vmatprep.subr.msk.bf16.mxu0 %vm1453_vm1, %v1049_v14 }
  0x37   : > { %1094 = vmatpush3.bf16.msra.mxu1 %v1091_v49 }
  0x38   : > { %1096 = vmatprep.subr.bf16.mxu1 %v1095_v60 }
  0x3b   : > { %1098 = vmatpush3.bf16.msra.mxu1 %v1095_v60 }
  0x3c   : > { %1054 = vmatpush3.bf16.xpose.msk.msra.mxu0 %vm1453_vm1, %v1049_v14  ;;  %1100 = vmatprep.subr.bf16.mxu1 %v1099_v63 }
  0x3d   : > { %1057 = vmatprep.subr.msk.bf16.mxu0 %vm1453_vm1, %v1055_v17 }
  0x3f   : > { %1102 = vmatpush3.bf16.msra.mxu1 %v1099_v63 }
  0x40   : > { %1104 = vmatprep.subr.bf16.mxu1 %v1103_v3 }
  0x43   : > { %1106 = vmatpush3.bf16.msra.mxu1 %v1103_v3 }
  0x44   : > { %1060 = vmatpush3.bf16.xpose.msk.msra.mxu0 %vm1453_vm1, %v1055_v17  ;;  %1108 = vmatprep.subr.bf16.mxu1 %v1107_v5 }
  0x45   : > { %1063 = vmatprep.subr.msk.bf16.mxu0 %vm1453_vm1, %v1061_v20 }
  0x47   : > { %1110 = vmatpush3.bf16.msra.mxu1 %v1107_v5 }
  0x4c   : > { %1066 = vmatpush3.bf16.xpose.msk.msra.mxu0 %vm1453_vm1, %v1061_v20 }
  0x4d   : > { %1069 = vmatprep.subr.msk.bf16.mxu0 %vm1453_vm1, %v1067_v23 }
  0x54   : > { %1072 = vmatpush3.bf16.xpose.msk.msra.mxu0 %vm1453_vm1, %v1067_v23 }
  0x55   : > { %1075 = vmatprep.subr.msk.bf16.mxu0 %vm1453_vm1, %v1073_v26 }
  0x5c   : > { %1078 = vmatpush3.bf16.xpose.msk.msra.mxu0 %vm1453_vm1, %v1073_v26 }
  0x63   : > { %994 = vmatmul.mubr.msk.f32.vlgmr.msra.gmra.mrb[0].mxu0 %vm422_vm0, %v389_v28 }
 0x136   : > { %v995_v32 = vpop.f32.mrb[0].mxu0 }
 0x137   : > { %v554_v33 = vadd.f32 %v995_v32, %v552_v31  ;;  %v543_v34 = vpop.f32.mrb[1].mxu0 }
 0x138   : > { %v553_v35 = vadd.f32 %v552_v31, %v543_v34 }
 0x139   : > { %v559_v37 = vsel %vm557_vm2, %v554_v33, -1e+30 }
 0x13a   : > { %v558_v36 = vsel %vm557_vm2, %v553_v35, -1e+30 }
 0x13b   : > { %560 = vmax.xlane.f32.xlu0 %v558_v36 }
 0x13f   : > { %562 = vmax.xlane.f32.xlu0 %v559_v37 }
 0x1c8   : > { %v561_v50 = vpop.xlane.xlu0 %560 }
 0x1c9   : > { %v564_v51 = vsub.f32 %v558_v36, %v561_v50 }
 0x1cb   : > { %v566_v52 = vmul.f32 1.442695, %v564_v51 }
 0x1cc   : > { %v563_v53 = vpop.xlane.xlu0 %562 }
 0x1cd   : > { %1189 = vpow2.f32 %v566_v52  ;;  %v565_v54 = vsub.f32 %v559_v37, %v563_v53 }
 0x1cf   : > { %v568_v55 = vmul.f32 1.442695, %v565_v54 }
 0x1d1   : > { %1191 = vpow2.f32 %v568_v55 }
 0x1d7   : > { %v1190_v56 = vpop.eup %1189 }
 0x1d8   : > { %570 = vadd.xlane.f32.xlu1 %v1190_v56 }
 0x1db   : > { %v1192_v57 = vpop.eup %1191 }
 0x1dc   : > { %572 = vadd.xlane.f32.xlu1 %v1192_v57 }
 0x265   : > { %v571_v6 = vpop.xlane.xlu1 %570 }
 0x266   : > { %1193 = vrcp.f32 %v571_v6 }
 0x269   : > { %v573_v7 = vpop.xlane.xlu1 %572 }
 0x26a   : > { %1195 = vrcp.f32 %v573_v7 }
 0x270   : > { %v1194_v8 = vpop.eup %1193 }
 0x271   : > { %v576_v9 = vmul.f32 %v1194_v8, %v1190_v56 }
 0x273   : > { %578 = vst [vmem:[%s345_s14] sm:$0xff] %v576_v9  ;;  %1028 = vmatprep.mubr.f32.mxu1 %v576_v9 }
 0x274   : > { %v1196_v10 = vpop.eup %1195 }
 0x275   : > { %v577_v11 = vmul.f32 %v1196_v10, %v1192_v57 }
 0x277   : > { %579 = vst [vmem:[%s345_s14 + $0x8] sm:$0xff] %v577_v11  ;;  %1029 = vmatmul.mubr.f32.vlgmr.msra.gmra.mrb[0].mxu1 %v577_v11  ;;  %s1203_s14 = scalar_lea.vmem %s1202_s12, 512 }
 0x278   : > { %p1205_p6 = scmp.lt.s32.totalorder %s1203_s14, %s1197_s13 }
 0x27a   : > { %p1206_p7 = por %p1205_p6, %p1204_p5 }
 0x27c   : > { %p1207_p9 = pnand %p1206_p7, %p1200_p4 }
 0x27e   : > { %1210 = shalt.err (!%p1207_p9)
}
 0x27f   : > { %s1211_s15 = scalar_lea.hbm %s1559_s9, 256  ;;  %s1215_s22 = scalar_lea.hbm %s1663_s5, 1024 }
 0x280   : > { %p1212_p10 = scmp.ne.s32.totalorder %s1559_s9, %s1211_s15  ;;  %p1216_p13 = scmp.lt.u32.totalorder %s1559_s9, %s1663_s5 }
 0x281   : > { %p1217_p0 = scmp.lt.u32.totalorder %s1215_s22, %s1211_s15  ;;  %p1219_p2 = scmp.lt.u32.totalorder %s1211_s15, %s1559_s9 }
 0x282   : > { %p1213_p11 = pnand %p1212_p10, %p1410_p3 }
 0x283   : > { %p1218_p1 = por %p1217_p0, %p1216_p13 }
 0x284   : > { %p1214_p12 = pneg %p1213_p11 }
 0x285   : > { %p1220_p4 = por %p1219_p2, %p1218_p1 }
 0x287   : > { %p1221_p5 = pnand %p1220_p4, %p1214_p12 }
 0x289   : > { %1224 = shalt.err (!%p1221_p5)
}
 0x28a   : > { %s1326_s13 = smov 128   ;;  %s1327_s14 = smov 8  }
 0x28b   : > { %1112 = dma.vmem_to_hbm [thread:$0]  (%p1410_p3), %s1561_s21, 256, %s1559_s9, %s663_s10, %s1326_s13, %s1326_s13, %s1327_s14  }
 0x28c   : > { %s338_s27 = scalar_lea.vmem [#allocation2], %s885_s17  ;;  %s1669_s8 = sshll.u32 %s1551_s26, 7 }
 0x28d   : > { %s679_s15 = sshll.u32 %s338_s27, 4  ;;  %s1597_s12 = scalar_lea.hbm %s1662_s4, %s1669_s8  ;;  %s1599_s15 = int_to_ptr.vmem [resolvable:$true] %s679_s15 }
 0x28e   : > { %s658_s21 = scalar_lea.sflag [#allocation3], %s1544_s16  ;;  %s1225_s17 = scalar_lea.vmem %s1599_s15, 256 }
 0x28f   : > { %p1226_p6 = scmp.ne.s32.totalorder %s1599_s15, %s1225_s17  ;;  %s1328_s26 = smov [#allocation2]  }
 0x290   : > { %s1229_s9 = sshll.u32 %s1328_s26, 4  ;;  %s1230_s9 = int_to_ptr.vmem [resolvable:$false] %s1229_s9 }
 0x291   : > { %p1227_p7 = pnand %p1226_p6, %p1410_p3  ;;  %s1231_s10 = scalar_lea.vmem %s1230_s9, 512 }
 0x292   : > { %p1232_p10 = scmp.lt.s32.totalorder %s1599_s15, %s1230_s9  ;;  %p1233_p11 = scmp.lt.s32.totalorder %s1231_s10, %s1225_s17 }
 0x293   : > { %p1228_p9 = pneg %p1227_p7 }
 0x294   : > { %p1234_p12 = por %p1233_p11, %p1232_p10 }
 0x296   : > { %p1235_p13 = pnand %p1234_p12, %p1228_p9 }
 0x34a   : > { %v1030_v12 = vpop.f32.mrb[0].mxu1 }
 0x34b   : > { %656 = vst.msk [vmem:[%s338_s27 + $0x8] sm:$0xff] %vm422_vm0, %v1030_v12  ;;  %v646_v13 = vpop.f32.mrb[1].mxu1 }
 0x34c   : > { %655 = vst.msk [vmem:[%s338_s27] sm:$0xff] %vm422_vm0, %v646_v13 }
 0x34d   : > { %1238 = shalt.err (!%p1235_p13)
}
 0x34e   : > { %s1239_s27 = scalar_lea.hbm %s1597_s12, 256  ;;  %s1243_s22 = scalar_lea.hbm %s1662_s4, 1024 }
 0x34f   : > { %p1240_p0 = scmp.ne.s32.totalorder %s1597_s12, %s1239_s27  ;;  %p1244_p4 = scmp.lt.u32.totalorder %s1597_s12, %s1662_s4 }
 0x350   : > { %p1245_p5 = scmp.lt.u32.totalorder %s1243_s22, %s1239_s27  ;;  %p1247_p7 = scmp.lt.u32.totalorder %s1239_s27, %s1597_s12 }
 0x351   : > { %p1241_p1 = pnand %p1240_p0, %p1410_p3 }
 0x352   : > { %p1246_p6 = por %p1245_p5, %p1244_p4 }
 0x353   : > { %p1242_p2 = pneg %p1241_p1 }
 0x354   : > { %p1248_p9 = por %p1247_p7, %p1246_p6 }
 0x356   : > { %p1249_p10 = pnand %p1248_p9, %p1242_p2 }
 0x358   : > { %1252 = shalt.err (!%p1249_p10)
}
 0x359   : > { %1111 = dma.vmem_to_hbm [thread:$0]  (%p1410_p3), %s1599_s15, 256, %s1597_s12, %s658_s21, %s1326_s13, %s1326_s13, %s1327_s14  }
 0x35a PF: > { %p1122_p11 = scmp.ge.s32.totalorder %s1323_s25, 2  ;;  %s713_s17 = sand.u32 1, %s1295_s18  }
 0x35b   : > { %s714_s10 = scalar_lea.sflag [#allocation3], %s713_s17 }
 0x35c   : > { %p1116_p12 = pnand %p1122_p11, %p1419_p8 }
 0x35e   : > { %1286 = dma.done.wait (!%p1116_p12), %s714_s10, 256  }
 0x35f   : > { %1288 = vsyncadd (!%p1116_p12), %s714_s10, 4294967040  ;;  %s723_s6 = scalar_lea.sflag [#allocation5], %s713_s17 }
 0x360   : > { %1290 = dma.done.wait (!%p1116_p12), %s723_s6, 256  }
 0x361   : > { %1292 = vsyncadd (!%p1116_p12), %s723_s6, 4294967040  ;;  %s22_s25 = sadd.s32 1, %s1323_s25   ;;  %s1670_s18 = smov %s1299_s19 }
 0x362   : > { %p19_p13 = scmp.ge.s32.totalorder %s22_s25, 6   ;;  %s1671_s19 = smov %s1303_s20 }
 0x363   : > { %s1672_s20 = smov %s1428_s11  ;;  %s1673_s21 = smov %s1315_s23 }
 0x364   : > { %s1674_s22 = smov %s1319_s24  ;;  %s1675_s23 = smov %s1678_s28 }
 0x365   : > { %s1676_s24 = smov %s1682_s29  ;;  %21 = sbr.rel (!%p19_p13) target bundleno = 7 (0x7), region = 97 }
 0x36c   :  { %728 = vsyncpa [#allocation3], 1 }
 0x36d   :  { %730 = vsyncpa [#allocation3 + $0x1], 1 }
 0x36e   :  { %731 = vsyncpa [#allocation5], 1 }
 0x36f   :  { %733 = vsyncpa [#allocation5 + $0x1], 1 }

</bundles_post_ra>
